<compile_context>
chip_gen: v7x
topology: tpu7x:2x2x1
jax: 0.10.0
libtpu: 0.0.40
codegen_flags: <defaults>
</compile_context>

<pallas_src>
import jax
import jax.numpy as jnp
from jax.experimental import pallas as pl
from jax.experimental.pallas import tpu as pltpu


def combined_block_kernel(p_ref, a_br_ref, a_out_ref, shifts_ref, o_ref):
    # p_ref:      (K, TM)   patchified input, pixels on the lane axis
    # a_br_ref:   (2C, K)   concatenated branch weights (project + 1x1 conv + BN scale folded)
    # a_out_ref:  (C, C)    out-block 1x1 conv weight with BN scale folded
    # shifts_ref: (3C, 1)   rows [0:2C) = branch shifts (cnn then attn), [2C:3C) = out shift
    # o_ref:      (C, TM)
    c = o_ref.shape[0]

    # single fused branch matmul: (2C, K) @ (K, TM) -> (2C, TM)
    z = jnp.dot(a_br_ref[...], p_ref[...], preferred_element_type=jnp.float32)
    h = jnp.maximum(z + shifts_ref[0:2 * c, :], 0.0)          # shift + ReLU (both branches)

    # hybrid fusion: sublane-aligned row split, essentially free
    feat = h[:c, :] + h[c:, :]

    # out block: 1x1 conv (BN scale folded) + shift + ReLU
    out = jnp.dot(a_out_ref[...], feat, preferred_element_type=jnp.float32)
    out = jnp.maximum(out + shifts_ref[2 * c:3 * c, :], 0.0)

    o_ref[...] = out.astype(o_ref.dtype)                      # lane-dense store (TM % 128 == 0)


def fold_bn(conv_bias, gamma, beta, running_mean, running_var, eps=1e-5):
    """Fold eval-mode BatchNorm (and the preceding conv bias) into scale/shift."""
    scale = gamma / jnp.sqrt(running_var + eps)
    shift = beta - running_mean * scale + conv_bias * scale
    return scale, shift


def combined_block_forward(x_nchw, params, stride, tm=512):
    B, Cin, H, W = x_nchw.shape
    s = stride
    Ho, Wo = H // s, W // s
    C = params["wp"].shape[1]
    K = Cin * s * s
    M = B * Ho * Wo

    # ---- Fold all linear ops that precede the first ReLU into the branch weights,
    #      and the out-block BN scale into its conv weight (tiny matrices; in a real
    #      deployment this would be precomputed once).
    w_cnn_eff = params["wp"] @ (params["w_cnn"] * params["s_cnn"][None, :])    # (K, C)
    w_attn_eff = params["wp"] @ (params["w_attn"] * params["s_attn"][None, :])  # (K, C)
    a_br = jnp.concatenate([w_cnn_eff, w_attn_eff], axis=1).T                  # (2C, K)
    a_out = (params["w_out"] * params["s_out"][None, :]).T                     # (C, C)
    shifts = jnp.concatenate(
        [params["b_cnn"], params["b_attn"], params["b_out"]]
    ).reshape(3 * C, 1)                                                        # (3C, 1)

    # ---- Patchify the project-conv input into a [K, M] slab (pixels on lanes),
    #      K ordering matches PyTorch conv weight flattening [ci, p, q].
    patches_t = (
        x_nchw.reshape(B, Cin, Ho, s, Wo, s)
        .transpose(1, 3, 5, 0, 2, 4)
        .reshape(K, M)
    )

    # ---- Tile the pixel axis; pad M so tiles divide evenly (padded pixels are
    #      computed on zeros and sliced off afterwards).  On v7x keep grid >= 2*TC
    #      steps when possible so both TensorCores stay busy.
    tm_eff = min(tm, pl.cdiv(M, 128) * 128)
    m_pad = pl.cdiv(M, tm_eff) * tm_eff
    if m_pad != M:
        patches_t = jnp.pad(patches_t, ((0, 0), (0, m_pad - M)))
    grid = (m_pad // tm_eff,)

    out_t = pl.pallas_call(
        combined_block_kernel,
        out_shape=jax.ShapeDtypeStruct((C, m_pad), jnp.float32),
        grid_spec=pltpu.PrefetchScalarGridSpec(
            num_scalar_prefetch=0,
            grid=grid,
            in_specs=[
                pl.BlockSpec((K, tm_eff), lambda i: (0, i)),      # patches (pipelined)
                pl.BlockSpec((2 * C, K), lambda i: (0, 0)),       # fused branch weights (resident)
                pl.BlockSpec((C, C), lambda i: (0, 0)),           # fused out weight (resident)
                pl.BlockSpec((3 * C, 1), lambda i: (0, 0)),       # packed shifts (resident)
            ],
            out_specs=pl.BlockSpec((C, tm_eff), lambda i: (0, i)),
        ),
        compiler_params=pltpu.CompilerParams(
            dimension_semantics=("parallel",),
            # let XLA fuse the patchify reshape/transpose/pad into the operand
            allow_input_fusion=[True, False, False, False],
        ),
    )(patches_t, a_br, a_out, shifts)

    # [C, M] -> NCHW
    return out_t[:, :M].reshape(C, B, Ho, Wo).transpose(1, 0, 2, 3)


def reference_forward(x_nchw, params, stride):
    """Pure-JAX reference mirroring the PyTorch forward (eval-mode BN), unfused."""
    B, Cin, H, W = x_nchw.shape
    s = stride
    Ho, Wo = H // s, W // s
    C = params["wp"].shape[1]
    K = Cin * s * s
    patches = (
        x_nchw.reshape(B, Cin, Ho, s, Wo, s)
        .transpose(0, 2, 4, 1, 3, 5)
        .reshape(-1, K)
    )
    y = patches @ params["wp"]
    cnn = jnp.maximum(y @ params["w_cnn"] * params["s_cnn"] + params["b_cnn"], 0.0)
    attn = jnp.maximum(y @ params["w_attn"] * params["s_attn"] + params["b_attn"], 0.0)
    feat = cnn + attn
    out = jnp.maximum(feat @ params["w_out"] * params["s_out"] + params["b_out"], 0.0)
    return out.reshape(B, Ho, Wo, C).transpose(0, 3, 1, 2)


def make_params(key, in_channels, out_channels, stride):
    s = stride
    K = in_channels * s * s
    C = out_channels
    ks = jax.random.split(key, 13)

    # project: Conv2d(in, out, kernel_size=stride, stride=stride, bias=False)
    wp_conv = jax.random.normal(ks[0], (C, in_channels, s, s), jnp.float32) * 0.1
    wp = wp_conv.reshape(C, K).T  # [K, C] for pixels @ weight

    def basic_conv1x1(k_w, k_b, k_g, k_beta):
        w = jax.random.normal(k_w, (C, C, 1, 1), jnp.float32) * 0.1
        b = jax.random.normal(k_b, (C,), jnp.float32) * 0.1
        gamma = 1.0 + 0.1 * jax.random.normal(k_g, (C,), jnp.float32)
        beta = 0.1 * jax.random.normal(k_beta, (C,), jnp.float32)
        running_mean = jnp.zeros((C,), jnp.float32)
        running_var = jnp.ones((C,), jnp.float32)
        scale, shift = fold_bn(b, gamma, beta, running_mean, running_var)
        return w.reshape(C, C).T, scale, shift  # weight as [C_in, C_out]

    w_cnn, s_cnn, b_cnn = basic_conv1x1(ks[1], ks[2], ks[3], ks[4])
    w_attn, s_attn, b_attn = basic_conv1x1(ks[5], ks[6], ks[7], ks[8])
    w_out, s_out, b_out = basic_conv1x1(ks[9], ks[10], ks[11], ks[12])

    return dict(
        wp=wp,
        w_cnn=w_cnn, s_cnn=s_cnn, b_cnn=b_cnn,
        w_attn=w_attn, s_attn=s_attn, b_attn=b_attn,
        w_out=w_out, s_out=s_out, b_out=b_out,
    )


if __name__ == "__main__":
    key = jax.random.PRNGKey(0)
    k_x, k_p = jax.random.split(key)

    B, Cin, H, W = 2, 4, 16, 16
    out_channels = 32
    stride = 2

    x = jax.random.normal(k_x, (B, Cin, H, W), jnp.float32)
    params = make_params(k_p, Cin, out_channels, stride)

    out = combined_block_forward(x, params, stride)
    out = jax.block_until_ready(out)

    ref = reference_forward(x, params, stride)
    assert out.shape == (B, out_channels, H // stride, W // stride), out.shape
    assert jnp.allclose(out, ref, atol=1e-4, rtol=1e-4), "mismatch vs reference"

    print("KERNEL_OK")
</pallas_src>

<mosaic_0001>
module attributes {stable_mosaic.version = 11 : i64} {
  func.func @combined_block_kernel(%arg0: i32, %arg1: memref<16x128xf32, #tpu.memory_space<vmem>>, %arg2: memref<64x16xf32, #tpu.memory_space<vmem>>, %arg3: memref<32x32xf32, #tpu.memory_space<vmem>>, %arg4: memref<96x1xf32, #tpu.memory_space<vmem>>, %arg5: memref<32x128xf32, #tpu.memory_space<vmem>>) attributes {dimension_semantics = [#tpu.dimension_semantics<parallel>], iteration_bounds = array<i64: 1>, scalar_prefetch = 0 : i64, scratch_operands = 0 : i64, tpu.core_type = #tpu.core_type<tc>, window_params = [{transform_indices = @transform_0, window_bounds = array<i64: 16, 128>}, {pipeline_mode = #tpu.pipeline_mode<synchronous>, transform_indices = @transform_1, window_bounds = array<i64: 64, 16>}, {pipeline_mode = #tpu.pipeline_mode<synchronous>, transform_indices = @transform_2, window_bounds = array<i64: 32, 32>}, {pipeline_mode = #tpu.pipeline_mode<synchronous>, transform_indices = @transform_3, window_bounds = array<i64: 96, 1>}, {transform_indices = @transform_4, window_bounds = array<i64: 32, 128>}]} {
    %c0 = arith.constant 0 : index
    %c0_0 = arith.constant 0 : index
    %0 = vector.load %arg2[%c0, %c0_0] : memref<64x16xf32, #tpu.memory_space<vmem>>, vector<64x16xf32>
    %c0_1 = arith.constant 0 : index
    %c0_2 = arith.constant 0 : index
    %1 = vector.load %arg1[%c0_1, %c0_2] : memref<16x128xf32, #tpu.memory_space<vmem>>, vector<16x128xf32>
    %cst = arith.constant dense<0.000000e+00> : vector<64x128xf32>
    %2 = tpu.matmul %0, %1, %cst {dimension_numbers = #tpu.dot_dimension_numbers<[1], [0], [0], [1], [0, 0, 1, 1], [], []>} : vector<64x16xf32>, vector<16x128xf32>, vector<64x128xf32> -> vector<64x128xf32>
    %c0_3 = arith.constant 0 : index
    %c0_4 = arith.constant 0 : index
    %3 = vector.load %arg4[%c0_3, %c0_4] : memref<96x1xf32, #tpu.memory_space<vmem>>, vector<64x1xf32>
    %4 = vector.broadcast %3 : vector<64x1xf32> to vector<64x128xf32>
    %5 = arith.addf %2, %4 : vector<64x128xf32>
    %cst_5 = arith.constant 0.000000e+00 : f32
    %6 = vector.broadcast %cst_5 : f32 to vector<64x128xf32>
    %7 = arith.maximumf %5, %6 : vector<64x128xf32>
    %8 = vector.extract_strided_slice %7 {offsets = [0, 0], sizes = [32, 128], strides = [1, 1]} : vector<64x128xf32> to vector<32x128xf32>
    %9 = vector.extract_strided_slice %7 {offsets = [32, 0], sizes = [32, 128], strides = [1, 1]} : vector<64x128xf32> to vector<32x128xf32>
    %10 = arith.addf %8, %9 : vector<32x128xf32>
    %c0_6 = arith.constant 0 : index
    %c0_7 = arith.constant 0 : index
    %11 = vector.load %arg3[%c0_6, %c0_7] : memref<32x32xf32, #tpu.memory_space<vmem>>, vector<32x32xf32>
    %cst_8 = arith.constant dense<0.000000e+00> : vector<32x128xf32>
    %12 = tpu.matmul %11, %10, %cst_8 {dimension_numbers = #tpu.dot_dimension_numbers<[1], [0], [0], [1], [0, 0, 1, 1], [], []>} : vector<32x32xf32>, vector<32x128xf32>, vector<32x128xf32> -> vector<32x128xf32>
    %c64 = arith.constant 64 : index
    %c0_9 = arith.constant 0 : index
    %13 = vector.load %arg4[%c64, %c0_9] : memref<96x1xf32, #tpu.memory_space<vmem>>, vector<32x1xf32>
    %14 = vector.broadcast %13 : vector<32x1xf32> to vector<32x128xf32>
    %15 = arith.addf %12, %14 : vector<32x128xf32>
    %cst_10 = arith.constant 0.000000e+00 : f32
    %16 = vector.broadcast %cst_10 : f32 to vector<32x128xf32>
    %17 = arith.maximumf %15, %16 : vector<32x128xf32>
    %c0_11 = arith.constant 0 : index
    %c0_12 = arith.constant 0 : index
    %18 = vector.load %arg5[%c0_11, %c0_12] : memref<32x128xf32, #tpu.memory_space<vmem>>, vector<32x128xf32>
    tpu.vector_store %arg5[%c0_11, %c0_12], %17 {strides = array<i32>} : memref<32x128xf32, #tpu.memory_space<vmem>>, vector<32x128xf32>,
    return
  }
  func.func @transform_0(%arg0: i32) -> (i32, i32) {
    %c0_i32 = arith.constant 0 : i32
    %c0_i32_0 = arith.constant 0 : i32
    return %c0_i32, %arg0 : i32, i32
  }
  func.func @transform_1(%arg0: i32) -> (i32, i32) {
    %c0_i32 = arith.constant 0 : i32
    %c0_i32_0 = arith.constant 0 : i32
    %c0_i32_1 = arith.constant 0 : i32
    return %c0_i32, %c0_i32_0 : i32, i32
  }
  func.func @transform_2(%arg0: i32) -> (i32, i32) {
    %c0_i32 = arith.constant 0 : i32
    %c0_i32_0 = arith.constant 0 : i32
    %c0_i32_1 = arith.constant 0 : i32
    return %c0_i32, %c0_i32_0 : i32, i32
  }
  func.func @transform_3(%arg0: i32) -> (i32, i32) {
    %c0_i32 = arith.constant 0 : i32
    %c0_i32_0 = arith.constant 0 : i32
    %c0_i32_1 = arith.constant 0 : i32
    return %c0_i32, %c0_i32_0 : i32, i32
  }
  func.func @transform_4(%arg0: i32) -> (i32, i32) {
    %c0_i32 = arith.constant 0 : i32
    %c0_i32_0 = arith.constant 0 : i32
    return %c0_i32, %arg0 : i32, i32
  }
}

</mosaic_0001>

<bundles_post_ra>
// kernel: tpu_custom_call.1
= control target key start
LH: loop header
LB: loop body
LE: loop exit
PB: predicated region body
PF: predicated region fallthrough
CT: control target
= control target key end

     0   :  { %vm76_vm0 = vcmask 130048   ;;  %v470_v4 = vmov 0   ;;  %s601_s0 = inlined_call_operand.vmem [shape: f32[16,128], index: 0, kind: input, shape index: {}]   ;;  %s602_s1 = inlined_call_operand.vmem [shape: f32[64,16], index: 1, kind: input, shape index: {}]   ;;  %s603_s2 = inlined_call_operand.vmem [shape: f32[32,32], index: 2, kind: input, shape index: {}]   ;;  %s604_s3 = inlined_call_operand.vmem [shape: f32[96,1], index: 3, kind: input, shape index: {}]   ;;  %s605_s4 = inlined_call_operand.hbm [shape: f32[32,128], index: 4, kind: output, shape index: {}]  }
   0x1   :  { %v26_v0 = vld [vmem:[%s601_s0] sm:$0xff]  ;;  %v27_v1 = vld [vmem:[%s601_s0 + $0x8] sm:$0xff]  ;;  %445 = vset.pattern.permute.xlu1 %v470_v4  ;;  %444 = vset.pattern.permute.xlu0 %v470_v4  ;;  %v20_v8 = vld [vmem:[%s602_s1 + $0x10] sm:$0xff] }
   0x2   :  { %v18_v2 = vld [vmem:[%s602_s1] sm:$0xff]  ;;  %v428_v3 = vpack.c.bf16 %v27_v1, %v26_v0  ;;  %v19_v7 = vld [vmem:[%s602_s1 + $0x8] sm:$0xff] }
   0x3   :  { %402 = vmatprep.mubr.msk.f32.mxu0 %vm76_vm0, %v18_v2  ;;  %v32_v5 = vld [vmem:[%s604_s3 + $0x20] sm:$0xff]  ;;  %v33_v9 = vld [vmem:[%s604_s3 + $0x28] sm:$0xff] }
   0x4   :  { %429 = vmatprep.subr.bf16.mxu0 %v428_v3  ;;  %v28_v6 = vld [vmem:[%s604_s3] sm:$0xff]  ;;  %58 = vperm.xlu1 %445, %v32_v5   ;;  %v29_v10 = vld [vmem:[%s604_s3 + $0x8] sm:$0xff] }
   0x5   :  { %431 = vmatpush3.bf16.msra.mxu0 %v428_v3  ;;  %38 = vperm.xlu0 %444, %v28_v6  }
   0x8   :  { %403 = vmatmul.mubr.msk.f32.vlgmr.msra.gmra.mrb[0].mxu0 %vm76_vm0, %v19_v7 }
   0x9   :  { %9 = vsyncpa [#allocation3], 0  ;;  %405 = vmatprep.mubr.msk.f32.mxu0 %vm76_vm0, %v20_v8  ;;  %v21_v11 = vld [vmem:[%s602_s1 + $0x18] sm:$0xff]  ;;  %63 = vperm.xlu1 %445, %v33_v9   ;;  %v22_v12 = vld [vmem:[%s602_s1 + $0x20] sm:$0xff]  ;;  %vm246_vm1 = vcmask 261120   ;;  %s471_s11 = smov [#allocation2]  }
   0xa   :  { %43 = vperm.xlu0 %444, %v29_v10   ;;  %v31_v13 = vld [vmem:[%s604_s3 + $0x18] sm:$0xff]  ;;  %v30_v14 = vld [vmem:[%s604_s3 + $0x10] sm:$0xff]  ;;  %v23_v15 = vld [vmem:[%s602_s1 + $0x28] sm:$0xff]  ;;  %s357_s12 = sshll.u32 %s471_s11, 4  ;;  %s358_s12 = int_to_ptr.vmem [resolvable:$true] %s357_s12 }
   0xb   :  { %v24_v16 = vld [vmem:[%s602_s1 + $0x30] sm:$0xff]  ;;  %v35_v17 = vld [vmem:[%s604_s3 + $0x38] sm:$0xff]  ;;  %v223_v20 = vld [vmem:[%s604_s3 + $0x48] sm:$0xff]  ;;  %p451_p1 = scmp.lt.s32.totalorder %s358_s12, %s358_s12 }
   0xc   :  { %406 = vmatmul.mubr.msk.f32.gmra.mrb[2].mxu0 %vm76_vm0, %v21_v11  ;;  %v34_v18 = vld [vmem:[%s604_s3 + $0x30] sm:$0xff]  ;;  %v25_v19 = vld [vmem:[%s602_s1 + $0x38] sm:$0xff]  ;;  %v222_v21 = vld [vmem:[%s604_s3 + $0x40] sm:$0xff] }
   0xd   :  { %408 = vmatprep.mubr.msk.f32.mxu0 %vm76_vm0, %v22_v12  ;;  %53 = vperm.xlu1 %445, %v31_v13   ;;  %v225_v22 = vld [vmem:[%s604_s3 + $0x58] sm:$0xff]  ;;  %v224_v23 = vld [vmem:[%s604_s3 + $0x50] sm:$0xff]  ;;  %v218_v24 = vld [vmem:[%s603_s2] sm:$0xff] }
   0xe   :  { %48 = vperm.xlu0 %444, %v30_v14   ;;  %422 = vmatprep.mubr.msk.f32.mxu1 %vm246_vm1, %v218_v24  ;;  %v219_v63 = vld [vmem:[%s603_s2 + $0x8] sm:$0xff]  ;;  %v220_v0 = vld [vmem:[%s603_s2 + $0x10] sm:$0xff]  ;;  %v221_v1 = vld [vmem:[%s603_s2 + $0x18] sm:$0xff]  ;;  %s446_s2 = scalar_lea.vmem %s358_s12, 512 }
   0xf   :  { %p447_p0 = scmp.ne.s32.totalorder %s358_s12, %s446_s2  ;;  %p452_p2 = scmp.lt.s32.totalorder %s446_s2, %s446_s2 }
  0x10   :  { %409 = vmatmul.mubr.msk.f32.gmra.mrb[4].mxu0 %vm76_vm0, %v23_v15 }
  0x11   :  { %411 = vmatprep.mubr.msk.f32.mxu0 %vm76_vm0, %v24_v16  ;;  %73 = vperm.xlu1 %445, %v35_v17   ;;  %p453_p3 = por %p452_p2, %p451_p1 }
  0x12   :  { %68 = vperm.xlu0 %444, %v34_v18  }
  0x13   :  { %p454_p4 = pnand %p453_p3, %p447_p0 }
  0x14   :  { %412 = vmatmul.mubr.msk.f32.gmra.mrb[6].mxu0 %vm76_vm0, %v25_v19 }
  0x15   :  { %233 = vperm.xlu1 %445, %v223_v20  }
  0x16   :  { %228 = vperm.xlu0 %444, %v222_v21  }
  0x19   :  { %243 = vperm.xlu1 %445, %v225_v22  }
  0x1a   :  { %238 = vperm.xlu0 %444, %v224_v23  }
  0x83   :  { %v59_v25 = vpop.permute.xlu1 %58 }
  0x84   :  { %v39_v26 = vpop.permute.xlu0 %38 }
  0x88   :  { %v64_v27 = vpop.permute.xlu1 %63 }
  0x89   :  { %v44_v29 = vpop.permute.xlu0 %43 }
  0x8c   :  { %v54_v33 = vpop.permute.xlu1 %53 }
  0x8d   :  { %v49_v34 = vpop.permute.xlu0 %48 }
  0x90   :  { %v74_v44 = vpop.permute.xlu1 %73 }
  0x91   :  { %v69_v49 = vpop.permute.xlu0 %68 }
  0x94   :  { %v234_v2 = vpop.permute.xlu1 %233 }
  0x95   :  { %v229_v3 = vpop.permute.xlu0 %228 }
  0x98   :  { %v244_v9 = vpop.permute.xlu1 %243 }
  0x99   :  { %v239_v12 = vpop.permute.xlu0 %238 }
  0xdb   :  { %v404_v28 = vpop.f32.mrb[0].mxu0 }
  0xdc   :  { %v167_v30 = vpop.f32.mrb[1].mxu0  ;;  %v173_v35 = vadd.f32 %v404_v28, %v44_v29 }
  0xdd   :  { %v168_v36 = vadd.f32 %v167_v30, %v39_v26 }
  0xde   :  { %v207_v41 = vmax.f32 %v173_v35, 0.0 }
  0xdf   :  { %v407_v31 = vpop.f32.mrb[2].mxu0  ;;  %v206_v45 = vmax.f32 %v168_v36, 0.0 }
  0xe0   :  { %v177_v32 = vpop.f32.mrb[3].mxu0  ;;  %v183_v42 = vadd.f32 %v407_v31, %v54_v33 }
  0xe1   :  { %v178_v46 = vadd.f32 %v177_v32, %v49_v34 }
  0xe2   :  { %v209_v55 = vmax.f32 %v183_v42, 0.0 }
  0xe3   :  { %v410_v37 = vpop.f32.mrb[4].mxu0  ;;  %v208_v57 = vmax.f32 %v178_v46, 0.0 }
  0xe4   :  { %v193_v38 = vadd.f32 %v410_v37, %v64_v27  ;;  %v187_v39 = vpop.f32.mrb[5].mxu0 }
  0xe5   :  { %v188_v40 = vadd.f32 %v187_v39, %v59_v25 }
  0xe6   :  { %v211_v43 = vmax.f32 %v193_v38, 0.0 }
  0xe7   :  { %v210_v47 = vmax.f32 %v188_v40, 0.0  ;;  %v413_v48 = vpop.f32.mrb[6].mxu0 }
  0xe8   :  { %v215_v50 = vadd.f32 %v211_v43, %v207_v41  ;;  %v203_v51 = vadd.f32 %v413_v48, %v74_v44  ;;  %v197_v52 = vpop.f32.mrb[7].mxu0 }
  0xe9   :  { %v214_v53 = vadd.f32 %v210_v47, %v206_v45  ;;  %v198_v54 = vadd.f32 %v197_v52, %v69_v49 }
  0xea   :  { %v213_v56 = vmax.f32 %v203_v51, 0.0 }
  0xeb   :  { %v212_v58 = vmax.f32 %v198_v54, 0.0  ;;  %v432_v59 = vpack.c.bf16 %v215_v50, %v214_v53 }
  0xec   :  { %v217_v60 = vadd.f32 %v213_v56, %v209_v55 }
  0xed   :  { %v216_v61 = vadd.f32 %v212_v58, %v208_v57  ;;  %433 = vmatprep.subr.bf16.mxu1 %v432_v59 }
  0xee   :  { %435 = vmatpush3.bf16.msra.mxu1 %v432_v59 }
  0xef   :  { %v436_v62 = vpack.c.bf16 %v217_v60, %v216_v61 }
  0xf1   :  { %437 = vmatprep.subr.bf16.mxu1 %v436_v62 }
  0xf2   :  { %439 = vmatpush3.bf16.msra.mxu1 %v436_v62 }
  0xf5   :  { %423 = vmatmul.mubr.msk.f32.vlgmr.msra.gmra.mrb[0].mxu1 %vm246_vm1, %v219_v63 }
  0xf6   :  { %425 = vmatprep.mubr.msk.f32.mxu1 %vm246_vm1, %v220_v0 }
  0xf9   :  { %426 = vmatmul.mubr.msk.f32.gmra.mrb[2].mxu1 %vm246_vm1, %v221_v1 }
 0x1c8   :  { %v424_v4 = vpop.f32.mrb[0].mxu1 }
 0x1c9   :  { %v331_v5 = vadd.f32 %v424_v4, %v234_v2  ;;  %v325_v6 = vpop.f32.mrb[1].mxu1 }
 0x1ca   :  { %v326_v7 = vadd.f32 %v325_v6, %v229_v3 }
 0x1cb   :  { %v345_v8 = vmax.f32 %v331_v5, 0.0 }
 0x1cc   :  { %v344_v10 = vmax.f32 %v326_v7, 0.0  ;;  %v427_v11 = vpop.f32.mrb[2].mxu1 }
 0x1cd   :  { %349 = vst [vmem:[#allocation2 + $0x8] sm:$0xff] %v345_v8  ;;  %v341_v13 = vadd.f32 %v427_v11, %v244_v9  ;;  %v335_v14 = vpop.f32.mrb[3].mxu1 }
 0x1ce   :  { %348 = vst [vmem:[#allocation2] sm:$0xff] %v344_v10  ;;  %v336_v15 = vadd.f32 %v335_v14, %v239_v12 }
 0x1cf   :  { %v347_v16 = vmax.f32 %v341_v13, 0.0 }
 0x1d0   :  { %v346_v17 = vmax.f32 %v336_v15, 0.0 }
 0x1d1   :  { %351 = vst [vmem:[#allocation2 + $0x18] sm:$0xff] %v347_v16 }
 0x1d2   :  { %350 = vst [vmem:[#allocation2 + $0x10] sm:$0xff] %v346_v17 }
 0x1d3   :  { %457 = shalt.err (!%p454_p4)
}
 0x1d4   :  { %s458_s15 = scalar_lea.hbm %s605_s4, 512 }
 0x1d5   :  { %p459_p5 = scmp.ne.s32.totalorder %s605_s4, %s458_s15  ;;  %p462_p6 = scmp.lt.u32.totalorder %s458_s15, %s605_s4 }
 0x1d7   :  { %p464_p7 = pnand %p462_p6, %p459_p5 }
 0x1d9   :  { %467 = shalt.err (!%p464_p7)
}
 0x1da   :  { %s472_s20 = smov 128   ;;  %s473_s21 = smov 8  }
 0x1db   :  { %363 = dma.vmem_to_hbm [thread:$0]  %s358_s12, 512, %s605_s4, [#allocation3], %s472_s20, %s472_s20, %s473_s21  }
 0x1dc   :  { %468 = dma.done.wait [#allocation3], 512  }
 0x1dd   :  { %469 = vsyncadd [#allocation3], 4294966784 }
 0x1de   :  { %367 = vsyncpa [#allocation3], 1 }

</bundles_post_ra>
